<compile_context>
chip_gen: v7x
topology: tpu7x:2x2x1
jax: 0.10.0
libtpu: 0.0.40
codegen_flags: <defaults>
</compile_context>

<pallas_src>
import functools

import jax
import jax.numpy as jnp
from jax.experimental import pallas as pl
from jax.experimental.pallas import tpu as pltpu  # noqa: F401  (kept for CompilerParams if tiling is added later)

_EPS = 1e-8


# ----------------------------------------------------------------------------
# Fused Pallas kernel: encoder MLP + DND cosine-similarity matmul
# ----------------------------------------------------------------------------

def _nec_fused_kernel(x_ref, w1_ref, b1_ref, w2_ref, b2_ref, memnt_ref,
                      keys_ref, scores_ref):
    """Linear -> ReLU -> Linear -> ReLU, then cosine scores vs all DND keys.

    memnt_ref holds the memory keys pre-normalized and pre-transposed to
    (E, A*M), so the similarity is a single lane-dense MXU matmul.
    """
    x = x_ref[...]                                               # (Bp, D_in)
    h = jnp.dot(x, w1_ref[...], preferred_element_type=jnp.float32) + b1_ref[...]
    h = jnp.maximum(h, 0.0)
    k = jnp.dot(h, w2_ref[...], preferred_element_type=jnp.float32) + b2_ref[...]
    k = jnp.maximum(k, 0.0)                                      # (Bp, E)
    keys_ref[...] = k

    # Query-side cosine normalization (norm clamped to eps, matching
    # torch.nn.functional.cosine_similarity eps semantics).
    norm = jnp.sqrt(jnp.sum(k * k, axis=-1, keepdims=True))
    k_n = k * (1.0 / jnp.maximum(norm, _EPS))

    # TODO(synk): for large mem_size, cast k_n / memnt to bf16 here (keeping
    # preferred_element_type=f32) and tile the A*M axis with a BlockSpec under
    # a vmem_limit_bytes budget (v7x has only 64 MiB VMEM).
    scores_ref[...] = jnp.dot(k_n, memnt_ref[...],
                              preferred_element_type=jnp.float32)  # (Bp, A*M)


# ----------------------------------------------------------------------------
# Wrappers
# ----------------------------------------------------------------------------

def _round_up(n, m):
    return ((n + m - 1) // m) * m


def prepare_dnd_memory(mem_keys):
    """(A, M, E) -> normalized, transposed (E, A*M).

    Query-independent, so it belongs at DND-write time, not in the per-step
    forward kernel. Column a*M + m corresponds to (action a, slot m).
    """
    A, M, E = mem_keys.shape
    norm = jnp.sqrt(jnp.sum(mem_keys * mem_keys, axis=-1, keepdims=True))
    m_n = mem_keys / jnp.maximum(norm, _EPS)
    return m_n.reshape(A * M, E).T                               # (E, A*M)


def nec_encode_and_score(x, w1, b1, w2, b2, mem_keys_nt):
    """Single fused pallas_call. Returns (keys (B,E), scores (B, A*M))."""
    B = x.shape[0]
    E = w1.shape[1]
    AM = mem_keys_nt.shape[1]

    # Pad batch to a multiple of 8 (f32 sublane height) -> unmasked stores.
    Bp = max(_round_up(B, 8), 8)
    if Bp != B:
        x = jnp.pad(x, ((0, Bp - B), (0, 0)))

    keys, scores = pl.pallas_call(
        _nec_fused_kernel,
        out_shape=(
            jax.ShapeDtypeStruct((Bp, E), jnp.float32),
            jax.ShapeDtypeStruct((Bp, AM), jnp.float32),
        ),
        in_specs=[
            pl.BlockSpec(x.shape, lambda: (0, 0)),
            pl.BlockSpec(w1.shape, lambda: (0, 0)),
            pl.BlockSpec(b1.shape, lambda: (0, 0)),
            pl.BlockSpec(w2.shape, lambda: (0, 0)),
            pl.BlockSpec(b2.shape, lambda: (0, 0)),
            pl.BlockSpec(mem_keys_nt.shape, lambda: (0, 0)),
        ],
        out_specs=(
            pl.BlockSpec((Bp, E), lambda: (0, 0)),
            pl.BlockSpec((Bp, AM), lambda: (0, 0)),
        ),
    )(x, w1, b1, w2, b2, mem_keys_nt)
    return keys[:B], scores[:B]


def nec_forward(x, params, *, p=8, alpha=1.0, return_all_values=False):
    """Mirrors NECNetwork.forward: returns (values, actions, indexes, scores, keys)."""
    keys, flat_scores = nec_encode_and_score(
        x, params["w1"], params["b1"], params["w2"], params["b2"],
        params["mem_keys_nt"])

    B = x.shape[0]
    A, M = params["mem_values"].shape
    scores_all = flat_scores.reshape(B, A, M)                    # (B, A, M)

    # TODO(synk): top-k / softmax-weighted read kept in plain JAX; only worth
    # moving into the kernel once mem_size is large enough that the (B, A*M)
    # score writeback dominates HBM traffic.
    top_scores, top_idx = jax.lax.top_k(scores_all, p)           # (B, A, p)

    # Gather stored values of the selected neighbors.
    mem_vals = jnp.broadcast_to(params["mem_values"][None, :, :], (B, A, M))
    nbr_vals = jnp.take_along_axis(mem_vals, top_idx, axis=-1)   # (B, A, p)

    # Kernel-weighted value estimate per action (softmax over neighbor scores,
    # temperature alpha — the DND "alpha" parameter).
    w = jax.nn.softmax(alpha * top_scores, axis=-1)              # (B, A, p)
    q = jnp.sum(w * nbr_vals, axis=-1)                           # (B, A)

    actions = jnp.argmax(q, axis=-1)                             # (B,)
    values = q if return_all_values else jnp.max(q, axis=-1)

    batch_idx = jnp.arange(B)
    indexes = top_idx[batch_idx, actions]                        # (B, p)
    scores = top_scores[batch_idx, actions]                      # (B, p)
    # TODO(synk): similarity_threshold is only used by the DND write path
    #             (append vs. update), which is not part of forward().
    return values, actions, indexes, scores, keys


# ----------------------------------------------------------------------------
# Deterministic parameter init + demo
# ----------------------------------------------------------------------------

def init_params(key, input_dim, n_actions, embedding_dim, mem_size):
    k1, k2, k3, k4, k5, k6 = jax.random.split(key, 6)
    s1 = 1.0 / jnp.sqrt(jnp.float32(input_dim))
    s2 = 1.0 / jnp.sqrt(jnp.float32(embedding_dim))
    mem_keys = jax.random.normal(k5, (n_actions, mem_size, embedding_dim),
                                 jnp.float32)
    return {
        "w1": jax.random.uniform(k1, (input_dim, embedding_dim),
                                 jnp.float32, -s1, s1),
        "b1": jax.random.uniform(k2, (1, embedding_dim), jnp.float32, -s1, s1),
        "w2": jax.random.uniform(k3, (embedding_dim, embedding_dim),
                                 jnp.float32, -s2, s2),
        "b2": jax.random.uniform(k4, (1, embedding_dim), jnp.float32, -s2, s2),
        # Pre-normalized + pre-transposed memory keys (computed at write time).
        "mem_keys_nt": prepare_dnd_memory(mem_keys),             # (E, A*M)
        "mem_values": jax.random.normal(k6, (n_actions, mem_size), jnp.float32),
    }


if __name__ == "__main__":
    B = 2               # batch
    INPUT_DIM = 16      # state dim
    N_ACTIONS = 4
    EMB = 32            # embedding_dim
    MEM = 64            # DND memory size per action
    P = 8               # n_neighbors

    key = jax.random.PRNGKey(0)
    kx, kp = jax.random.split(key)
    x = jax.random.normal(kx, (B, INPUT_DIM), jnp.float32)
    params = init_params(kp, INPUT_DIM, N_ACTIONS, EMB, MEM)

    fwd = jax.jit(functools.partial(nec_forward, p=P, alpha=1.0,
                                    return_all_values=False))
    values, actions, indexes, scores, keys = fwd(x, params)
    jax.block_until_ready((values, actions, indexes, scores, keys))

    assert values.shape == (B,)
    assert actions.shape == (B,)
    assert indexes.shape == (B, P)
    assert scores.shape == (B, P)
    assert keys.shape == (B, EMB)
    print("KERNEL_OK")
</pallas_src>

<mosaic_0001>
module attributes {stable_mosaic.version = 11 : i64} {
  func.func @_nec_fused_kernel(%arg0: memref<8x16xf32, #tpu.memory_space<vmem>>, %arg1: memref<16x32xf32, #tpu.memory_space<vmem>>, %arg2: memref<1x32xf32, #tpu.memory_space<vmem>>, %arg3: memref<32x32xf32, #tpu.memory_space<vmem>>, %arg4: memref<1x32xf32, #tpu.memory_space<vmem>>, %arg5: memref<32x256xf32, #tpu.memory_space<vmem>>, %arg6: memref<8x32xf32, #tpu.memory_space<vmem>>, %arg7: memref<8x256xf32, #tpu.memory_space<vmem>>) attributes {dimension_semantics = [], scalar_prefetch = 0 : i64, scratch_operands = 0 : i64, tpu.core_type = #tpu.core_type<tc>} {
    %c0 = arith.constant 0 : index
    %c0_0 = arith.constant 0 : index
    %0 = vector.load %arg0[%c0, %c0_0] : memref<8x16xf32, #tpu.memory_space<vmem>>, vector<8x16xf32>
    %c0_1 = arith.constant 0 : index
    %c0_2 = arith.constant 0 : index
    %1 = vector.load %arg1[%c0_1, %c0_2] : memref<16x32xf32, #tpu.memory_space<vmem>>, vector<16x32xf32>
    %cst = arith.constant dense<0.000000e+00> : vector<8x32xf32>
    %2 = tpu.matmul %0, %1, %cst {dimension_numbers = #tpu.dot_dimension_numbers<[1], [0], [0], [1], [0, 0, 1, 1], [], []>} : vector<8x16xf32>, vector<16x32xf32>, vector<8x32xf32> -> vector<8x32xf32>
    %c0_3 = arith.constant 0 : index
    %c0_4 = arith.constant 0 : index
    %3 = vector.load %arg2[%c0_3, %c0_4] : memref<1x32xf32, #tpu.memory_space<vmem>>, vector<1x32xf32>
    %4 = vector.broadcast %3 : vector<1x32xf32> to vector<8x32xf32>
    %5 = arith.addf %2, %4 : vector<8x32xf32>
    %cst_5 = arith.constant 0.000000e+00 : f32
    %6 = vector.broadcast %cst_5 : f32 to vector<8x32xf32>
    %7 = arith.maximumf %5, %6 : vector<8x32xf32>
    %c0_6 = arith.constant 0 : index
    %c0_7 = arith.constant 0 : index
    %8 = vector.load %arg3[%c0_6, %c0_7] : memref<32x32xf32, #tpu.memory_space<vmem>>, vector<32x32xf32>
    %cst_8 = arith.constant dense<0.000000e+00> : vector<8x32xf32>
    %9 = tpu.matmul %7, %8, %cst_8 {dimension_numbers = #tpu.dot_dimension_numbers<[1], [0], [0], [1], [0, 0, 1, 1], [], []>} : vector<8x32xf32>, vector<32x32xf32>, vector<8x32xf32> -> vector<8x32xf32>
    %c0_9 = arith.constant 0 : index
    %c0_10 = arith.constant 0 : index
    %10 = vector.load %arg4[%c0_9, %c0_10] : memref<1x32xf32, #tpu.memory_space<vmem>>, vector<1x32xf32>
    %11 = vector.broadcast %10 : vector<1x32xf32> to vector<8x32xf32>
    %12 = arith.addf %9, %11 : vector<8x32xf32>
    %cst_11 = arith.constant 0.000000e+00 : f32
    %13 = vector.broadcast %cst_11 : f32 to vector<8x32xf32>
    %14 = arith.maximumf %12, %13 : vector<8x32xf32>
    %c0_12 = arith.constant 0 : index
    %c0_13 = arith.constant 0 : index
    %15 = vector.load %arg6[%c0_12, %c0_13] : memref<8x32xf32, #tpu.memory_space<vmem>>, vector<8x32xf32>
    tpu.vector_store %arg6[%c0_12, %c0_13], %14 {strides = array<i32>} : memref<8x32xf32, #tpu.memory_space<vmem>>, vector<8x32xf32>,
    %16 = arith.mulf %14, %14 : vector<8x32xf32>
    %cst_14 = arith.constant dense<0.000000e+00> : vector<8xf32>
    %17 = vector.multi_reduction <add>, %16, %cst_14 [1] : vector<8x32xf32> to vector<8xf32>
    %18 = vector.shape_cast %17 : vector<8xf32> to vector<8x1xf32>
    %19 = math.sqrt %18 : vector<8x1xf32>
    %cst_15 = arith.constant 9.99999993E-9 : f32
    %20 = vector.broadcast %cst_15 : f32 to vector<8x1xf32>
    %21 = arith.maximumf %19, %20 : vector<8x1xf32>
    %cst_16 = arith.constant 1.000000e+00 : f32
    %22 = vector.broadcast %cst_16 : f32 to vector<8x1xf32>
    %23 = arith.divf %22, %21 : vector<8x1xf32>
    %24 = vector.broadcast %23 : vector<8x1xf32> to vector<8x32xf32>
    %25 = arith.mulf %14, %24 : vector<8x32xf32>
    %c0_17 = arith.constant 0 : index
    %c0_18 = arith.constant 0 : index
    %26 = vector.load %arg5[%c0_17, %c0_18] : memref<32x256xf32, #tpu.memory_space<vmem>>, vector<32x256xf32>
    %cst_19 = arith.constant dense<0.000000e+00> : vector<8x256xf32>
    %27 = tpu.matmul %25, %26, %cst_19 {dimension_numbers = #tpu.dot_dimension_numbers<[1], [0], [0], [1], [0, 0, 1, 1], [], []>} : vector<8x32xf32>, vector<32x256xf32>, vector<8x256xf32> -> vector<8x256xf32>
    %c0_20 = arith.constant 0 : index
    %c0_21 = arith.constant 0 : index
    %28 = vector.load %arg7[%c0_20, %c0_21] : memref<8x256xf32, #tpu.memory_space<vmem>>, vector<8x256xf32>
    tpu.vector_store %arg7[%c0_20, %c0_21], %27 {strides = array<i32>} : memref<8x256xf32, #tpu.memory_space<vmem>>, vector<8x256xf32>,
    return
  }
}

</mosaic_0001>

<bundles_post_ra>
// kernel: nec_forward.1
= control target key start
LH: loop header
LB: loop body
LE: loop exit
PB: predicated region body
PF: predicated region fallthrough
CT: control target
= control target key end

     0   :  { %13 = vsyncpa [#allocation3], 0  ;;  %s544_s0 = inlined_call_operand.vmem [shape: f32[8,16], index: 0, kind: input, shape index: {}]   ;;  %s545_s1 = inlined_call_operand.vmem [shape: f32[16,32], index: 1, kind: input, shape index: {}]   ;;  %s546_s2 = inlined_call_operand.vmem [shape: f32[1,32], index: 2, kind: input, shape index: {}]   ;;  %s547_s3 = inlined_call_operand.hbm [shape: f32[32,32], index: 3, kind: input, shape index: {}]   ;;  %s548_s4 = inlined_call_operand.vmem [shape: f32[1,32], index: 4, kind: input, shape index: {}]   ;;  %s549_s5 = inlined_call_operand.hbm [shape: f32[32,256], index: 5, kind: input, shape index: {}]   ;;  %s550_s6 = inlined_call_operand.vmem [shape: f32[8,32], index: 6, kind: output, shape index: {0}]   ;;  %s551_s7 = inlined_call_operand.vmem [shape: f32[8,256], index: 7, kind: output, shape index: {1}]  }
   0x1   :  { %14 = vsyncpa [#allocation5], 0  ;;  %s443_s24 = smov [#allocation2]   ;;  %s395_s28 = scalar_lea.hbm %s547_s3, 512 }
   0x2   :  { %s26_s25 = sshll.u32 %s443_s24, 4  ;;  %p396_p0 = scmp.ne.s32.totalorder %s547_s3, %s395_s28  ;;  %s27_s25 = int_to_ptr.vmem [resolvable:$true] %s26_s25 }
   0x3   :  { %p399_p1 = scmp.lt.u32.totalorder %s395_s28, %s547_s3 }
   0x5   :  { %p401_p2 = pnand %p399_p1, %p396_p0 }
   0x7   :  { %404 = shalt.err (!%p401_p2)
}
   0x8   :  { %s405_s10 = scalar_lea.vmem %s27_s25, 512  ;;  %p410_p4 = scmp.lt.s32.totalorder %s27_s25, %s27_s25 }
   0x9   :  { %p406_p3 = scmp.ne.s32.totalorder %s27_s25, %s405_s10  ;;  %p411_p5 = scmp.lt.s32.totalorder %s405_s10, %s405_s10 }
   0xb   :  { %p412_p6 = por %p411_p5, %p410_p4 }
   0xd   :  { %p413_p7 = pnand %p412_p6, %p406_p3 }
   0xf   :  { %416 = shalt.err (!%p413_p7)
}
  0x10   :  { %s444_s11 = smov 128   ;;  %s445_s12 = smov 8  }
  0x11   :  { %32 = dma.hbm_to_vmem [thread:$0]  %s547_s3, 512, %s27_s25, [#allocation3], %s444_s11, %s444_s11, %s445_s12  }
  0x12   :  { %s446_s15 = smov [#allocation4]   ;;  %s417_s19 = scalar_lea.hbm %s549_s5, 1024 }
  0x13   :  { %s40_s16 = sshll.u32 %s446_s15, 4  ;;  %p418_p8 = scmp.ne.s32.totalorder %s549_s5, %s417_s19  ;;  %s41_s16 = int_to_ptr.vmem [resolvable:$true] %s40_s16 }
  0x14   :  { %p421_p9 = scmp.lt.u32.totalorder %s417_s19, %s549_s5 }
  0x16   :  { %p423_p10 = pnand %p421_p9, %p418_p8 }
  0x18   :  { %426 = shalt.err (!%p423_p10)
}
  0x19   :  { %s427_s24 = scalar_lea.vmem %s41_s16, 1024  ;;  %p432_p12 = scmp.lt.s32.totalorder %s41_s16, %s41_s16 }
  0x1a   :  { %p428_p11 = scmp.ne.s32.totalorder %s41_s16, %s427_s24  ;;  %p433_p13 = scmp.lt.s32.totalorder %s427_s24, %s427_s24 }
  0x1c   :  { %p434_p0 = por %p433_p13, %p432_p12 }
  0x1e   :  { %p435_p1 = pnand %p434_p0, %p428_p11 }
  0x20   :  { %438 = shalt.err (!%p435_p1)
}
  0x21   :  { %s447_s3 = smov 256   ;;  %s448_s25 = smov 16  }
  0x22   :  { %46 = dma.hbm_to_vmem [thread:$0]  %s549_s5, 1024, %s41_s16, [#allocation5], %s447_s3, %s447_s3, %s448_s25  }
  0x23   :  { %439 = dma.done.wait [#allocation3], 512  }
  0x24   :  { %440 = vsyncadd [#allocation3], 4294966784 }
  0x25   :  { %441 = dma.done.wait [#allocation5], 1024  }
  0x26   :  { %442 = vsyncadd [#allocation5], 4294966272  ;;  %v449_v0 = vmov 0.0|0.0   ;;  %vm450_vm0 = vmmov 0   ;;  %v451_v1 = vmov 0.0   ;;  %v54_v2 = vld [vmem:[%s545_s1] sm:$0xff] }
  0x27   :  { %365 = vmatprep.subr.bf16.mxu0 %v449_v0  ;;  %351 = vmatprep.mubr.msk.f32.mxu0 %vm450_vm0, %v451_v1  ;;  %v55_v3 = vld [vmem:[%s545_s1 + $0x8] sm:$0xff]  ;;  %v138_v5 = vld [vmem:[#allocation2] sm:$0xff]  ;;  %vm63_vm1 = vcmask 130048   ;;  %v140_v9 = vld [vmem:[#allocation2 + $0x10] sm:$0xff]  ;;  %vm149_vm2 = vcmask 261120  }
  0x28   :  { %368 = vmatprep.subr.bf16.mxu1 %v449_v0  ;;  %362 = vmatprep.mubr.msk.f32.mxu1 %vm450_vm0, %v451_v1  ;;  %v366_v4 = vpack.c.bf16 %v55_v3, %v54_v2  ;;  %v139_v6 = vld [vmem:[#allocation2 + $0x8] sm:$0xff]  ;;  %v53_v8 = vld [vmem:[%s544_s0] sm:$0xff]  ;;  %v141_v10 = vld [vmem:[#allocation2 + $0x18] sm:$0xff] }
  0x29   :  { %v369_v7 = vpack.c.bf16 %v139_v6, %v138_v5  ;;  %v372_v11 = vpack.c.bf16 %v141_v10, %v140_v9  ;;  %v334_v12 = vld [vmem:[%s546_s2] ss:$0 sm:$0xff]  ;;  %v241_v24 = vld [vmem:[#allocation4 + $0x8] sm:$0xff]  ;;  %v243_v25 = vld [vmem:[#allocation4 + $0x18] sm:$0xff] }
  0x2a   :  { %367 = vmatpush3.bf16.msra.mxu0 %v366_v4  ;;  %v336_v17 = vld [vmem:[%s548_s4] ss:$0 sm:$0xff]  ;;  %v374_v27 = vpack.c.bf16 %v243_v25, %v241_v24  ;;  %v242_v28 = vld [vmem:[#allocation4 + $0x10] sm:$0xff]  ;;  %v245_v29 = vld [vmem:[#allocation4 + $0x28] sm:$0xff] }
  0x2b   :  { %370 = vmatpush3.bf16.msra.mxu1 %v369_v7  ;;  %v240_v26 = vld [vmem:[#allocation4] sm:$0xff]  ;;  %v247_v30 = vld [vmem:[#allocation4 + $0x38] sm:$0xff]  ;;  %v246_v34 = vld [vmem:[#allocation4 + $0x30] sm:$0xff] }
  0x2c   :  { %371 = vmatprep.subr.bf16.mxu1 %v449_v0  ;;  %v376_v31 = vpack.c.bf16 %v242_v28, %v240_v26  ;;  %v378_v32 = vpack.c.bf16 %v247_v30, %v245_v29  ;;  %v244_v33 = vld [vmem:[#allocation4 + $0x20] sm:$0xff]  ;;  %375 = vmatprep.subr.bf16.mxu0 %v374_v27 }
  0x2d   :  { %352 = vmatmul.mubr.msk.f32.vlgmr.msra.gmra.mrb[0].mxu0 %vm63_vm1, %v53_v8  ;;  %v380_v35 = vpack.c.bf16 %v246_v34, %v244_v33 }
  0x2e   :  { %315 = vmatprep.mubr.f32.mxu0 %v451_v1  ;;  %377 = vmatpush1.bf16.msra.mxu0 %v376_v31 }
  0x2f   :  { %373 = vmatpush3.bf16.msra.mxu1 %v372_v11  ;;  %379 = vmatprep.subr.bf16.mxu0 %v378_v32 }
  0x32   :  { %381 = vmatpush1.bf16.msra.mxu0 %v380_v35 }
 0x100   :  { %v133_v13 = vpop.f32.mrb[0].mxu0 }
 0x101   :  { %v134_v14 = vadd.f32 %v334_v12, %v133_v13  ;;  %v353_v15 = vpop.f32.mrb[1].mxu0 }
 0x103   :  { %v137_v16 = vmax.f32 %v134_v14, 0.0 }
 0x105   :  { %363 = vmatmul.mubr.msk.f32.vlgmr.msra.gmra.mrb[0].mxu1 %vm149_vm2, %v137_v16 }
 0x1d8   :  { %v219_v18 = vpop.f32.mrb[0].mxu1 }
 0x1d9   :  { %v220_v19 = vadd.f32 %v336_v17, %v219_v18  ;;  %v364_v20 = vpop.f32.mrb[1].mxu1 }
 0x1db   :  { %v223_v21 = vmax.f32 %v220_v19, 0.0 }
 0x1dd   :  { %224 = vst.msk [vmem:[%s550_s6] sm:$0xff] %vm149_vm2, %v223_v21  ;;  %v225_v22 = vmul.f32 %v223_v21, %v223_v21 }
 0x1df   :  { %v226_v23 = vsel %vm149_vm2, %v225_v22, 0.0 }
 0x1e0   :  { %227 = vadd.xlane.f32.xlu0 %v226_v23 }
 0x26d   :  { %v228_v36 = vpop.xlane.xlu0 %227 }
 0x26e   :  { %391 = vrsqrt.f32 %v228_v36  ;;  %vm231_vm3 = vcmp.eq.f32.partialorder %v228_v36, inf  ;;  %v234_v39 = vand.u32 2147483648, %v228_v36  ;;  %vm233_vm4 = vcmp.eq.f32.partialorder %v228_v36, 0.0 }
 0x278   :  { %v392_v37 = vpop.eup %391 }
 0x279   :  { %v230_v38 = vmul.f32 %v392_v37, %v228_v36 }
 0x27b   :  { %v232_v40 = vsel %vm231_vm3, %v228_v36, %v230_v38 }
 0x27c   :  { %v235_v41 = vsel %vm233_vm4, %v234_v39, %v232_v40 }
 0x27d   :  { %v236_v42 = vmax.f32 %v235_v41, 1e-08 }
 0x27f   :  { %393 = vrcp.f32 %v236_v42 }
 0x289   :  { %v394_v43 = vpop.eup %393 }
 0x28a   :  { %v239_v44 = vmul.f32 %v394_v43, %v223_v21 }
 0x28c   :  { %338 = vmatmul.mubr.msk.f32.vlgmr.msra.gmra.mrb[2].mxu0 %vm149_vm2, %v239_v44 }
 0x35f   :  { %v317_v45 = vpop.f32.mrb[2].mxu0 }
 0x360   :  { %322 = vst [vmem:[%s551_s7] sm:$0xff] %v317_v45  ;;  %v319_v46 = vpop.f32.mrb[3].mxu0 }
 0x361   :  { %323 = vst [vmem:[%s551_s7 + $0x8] sm:$0xff] %v319_v46 }
 0x362   :  { %332 = vsyncpa [#allocation3], 1 }
 0x363   :  { %333 = vsyncpa [#allocation5], 1 }

</bundles_post_ra>
